<compile_context>
chip_gen: v7x
topology: tpu7x:2x2x1
jax: 0.10.0
libtpu: 0.0.40
codegen_flags: <defaults>
</compile_context>

<pallas_src>
import jax
import jax.numpy as jnp
from jax.experimental import pallas as pl
from jax.experimental.pallas import tpu as pltpu


# Realized module configuration.
INPUT_SIZE, HIDDEN_SIZE, N_HIDDEN, OUTPUT_SIZE = 16, 32, 2, 8
LANES = 128
PACK = LANES // OUTPUT_SIZE      # 16 batch rows packed into one lane-dense row
SUBLANE = 16                     # packed-row alignment (bf16 sublane packing)


def _leaky_relu(x, slope=0.2):
    return jnp.where(x >= 0, x, slope * x)


def _round_up(a, m):
    return (a + m - 1) // m * m


def clean_mlp_kernel(x_ref, w1_ref, b1_ref, w2_ref, b2_ref, w3_ref, b3_ref, o_ref):
    # x_ref: (TB, PACK*16) bf16; w*_ref: bf16 block-diagonal; b*_ref: f32.
    # All matmuls accumulate in f32 on the MXU; activations stay in registers.
    h = jnp.dot(x_ref[...], w1_ref[...], preferred_element_type=jnp.float32)
    h = _leaky_relu(h + b1_ref[...])
    h = jnp.dot(h.astype(w2_ref.dtype), w2_ref[...], preferred_element_type=jnp.float32)
    h = _leaky_relu(h + b2_ref[...])
    o = jnp.dot(h.astype(w3_ref.dtype), w3_ref[...], preferred_element_type=jnp.float32)
    o_ref[...] = (o + b3_ref[...]).astype(o_ref.dtype)


def pack_params(params):
    """Block-diagonal (kron) packing so PACK batch rows share one lane-dense row."""
    eye = jnp.eye(PACK, dtype=jnp.float32)
    w1 = jnp.kron(eye, params["w1"]).astype(jnp.bfloat16)        # (256, 512)
    w2 = jnp.kron(eye, params["w2"]).astype(jnp.bfloat16)        # (512, 512)
    w3 = jnp.kron(eye, params["w3"]).astype(jnp.bfloat16)        # (512, 128)
    b1 = jnp.tile(params["b1"].astype(jnp.float32), (1, PACK))   # (1, 512)
    b2 = jnp.tile(params["b2"].astype(jnp.float32), (1, PACK))   # (1, 512)
    b3 = jnp.tile(params["b3"].astype(jnp.float32), (1, PACK))   # (1, 128)
    return w1, b1, w2, b2, w3, b3


def clean_mlp(x, params, block_rows=16 * 1024):
    """x: (B, INPUT_SIZE) float. Returns (B, OUTPUT_SIZE) float32."""
    B, in_size = x.shape
    assert in_size == INPUT_SIZE
    out_size = params["w3"].shape[1]
    assert out_size == OUTPUT_SIZE and LANES % out_size == 0

    w1, b1, w2, b2, w3, b3 = pack_params(params)
    in_lanes = PACK * in_size      # 256
    out_lanes = PACK * out_size    # 128

    # Tile size in original batch rows: multiple of PACK*SUBLANE, no bigger than
    # the (aligned) batch itself.
    row_align = PACK * SUBLANE                                   # 256 rows
    block_rows = min(max(block_rows, row_align), _round_up(B, row_align))
    block_rows = _round_up(block_rows, row_align)
    b_pad = _round_up(B, block_rows)        # pad batch tail -> clean grid
    rows_p = b_pad // PACK                  # total packed rows
    tb_p = block_rows // PACK               # packed rows per grid step
    grid = (rows_p // tb_p,)

    xp = jnp.pad(x.astype(jnp.bfloat16), ((0, b_pad - B), (0, 0)))
    xp = xp.reshape(rows_p, in_lanes)       # lane-dense packed input

    resident = lambda a: pl.BlockSpec(a.shape, lambda i: (0, 0))  # stays in VMEM

    out_p = pl.pallas_call(
        clean_mlp_kernel,
        out_shape=jax.ShapeDtypeStruct((rows_p, out_lanes), jnp.float32),
        grid=grid,
        in_specs=[
            pl.BlockSpec((tb_p, in_lanes), lambda i: (i, 0)),     # streamed x
            resident(w1), resident(b1),
            resident(w2), resident(b2),
            resident(w3), resident(b3),
        ],
        out_specs=pl.BlockSpec((tb_p, out_lanes), lambda i: (i, 0)),
        compiler_params=pltpu.CompilerParams(
            dimension_semantics=("parallel",),    # megacore sharding on v7x
            vmem_limit_bytes=32 * 1024 * 1024,
        ),
    )(xp, w1, b1, w2, b2, w3, b3)

    # Unpack lane-dense slab back to (B, OUTPUT_SIZE).
    return out_p.reshape(b_pad, out_size)[:B]


def init_params(key, input_size, hidden_size, output_size):
    """Deterministic init mimicking PyTorch Linear (uniform +-1/sqrt(fan_in)).
    Weights stored as (in, out) so the kernel computes x @ W + b."""
    ks = jax.random.split(key, 6)

    def linear(kw, kb, fan_in, fan_out):
        bound = 1.0 / jnp.sqrt(fan_in)
        w = jax.random.uniform(kw, (fan_in, fan_out), jnp.float32, -bound, bound)
        b = jax.random.uniform(kb, (1, fan_out), jnp.float32, -bound, bound)
        return w, b

    w1, b1 = linear(ks[0], ks[1], input_size, hidden_size)
    w2, b2 = linear(ks[2], ks[3], hidden_size, hidden_size)
    w3, b3 = linear(ks[4], ks[5], hidden_size, output_size)
    return dict(w1=w1, b1=b1, w2=w2, b2=b2, w3=w3, b3=b3)


def clean_mlp_ref(x, params):
    """Pure-JAX f32 reference for correctness checking."""
    h = _leaky_relu(x @ params["w1"] + params["b1"])
    h = _leaky_relu(h @ params["w2"] + params["b2"])
    return h @ params["w3"] + params["b3"]


if __name__ == "__main__":
    key = jax.random.PRNGKey(0)
    kx, kp, kx2 = jax.random.split(key, 3)
    params = init_params(kp, INPUT_SIZE, HIDDEN_SIZE, OUTPUT_SIZE)

    # Small smoke test (single grid step, batch padded 32 -> 256 internally).
    x = jax.random.normal(kx, (32, INPUT_SIZE), jnp.float32)
    out = jax.block_until_ready(clean_mlp(x, params))
    ref = clean_mlp_ref(x, params)
    assert out.shape == (32, OUTPUT_SIZE)
    # bf16 inputs/weights vs f32 reference -> loosened tolerance.
    assert jnp.allclose(out, ref, atol=5e-2, rtol=5e-2), float(jnp.max(jnp.abs(out - ref)))

    # Multi-step grid + batch-tail padding path (grid=(2,), tail 1000 -> 1024).
    x2 = jax.random.normal(kx2, (1000, INPUT_SIZE), jnp.float32)
    out2 = jax.block_until_ready(clean_mlp(x2, params, block_rows=512))
    ref2 = clean_mlp_ref(x2, params)
    assert out2.shape == (1000, OUTPUT_SIZE)
    assert jnp.allclose(out2, ref2, atol=5e-2, rtol=5e-2), float(jnp.max(jnp.abs(out2 - ref2)))

    print("KERNEL_OK")
</pallas_src>

<mosaic_0001>
module attributes {stable_mosaic.version = 11 : i64} {
  func.func @clean_mlp_kernel(%arg0: i32, %arg1: memref<16x256xbf16, #tpu.memory_space<vmem>>, %arg2: memref<256x512xbf16, #tpu.memory_space<vmem>>, %arg3: memref<1x512xf32, #tpu.memory_space<vmem>>, %arg4: memref<512x512xbf16, #tpu.memory_space<vmem>>, %arg5: memref<1x512xf32, #tpu.memory_space<vmem>>, %arg6: memref<512x128xbf16, #tpu.memory_space<vmem>>, %arg7: memref<1x128xf32, #tpu.memory_space<vmem>>, %arg8: memref<16x128xf32, #tpu.memory_space<vmem>>) attributes {dimension_semantics = [#tpu.dimension_semantics<parallel>], iteration_bounds = array<i64: 1>, scalar_prefetch = 0 : i64, scratch_operands = 0 : i64, tpu.core_type = #tpu.core_type<tc>, window_params = [{transform_indices = @transform_0, window_bounds = array<i64: 16, 256>}, {pipeline_mode = #tpu.pipeline_mode<synchronous>, transform_indices = @transform_1, window_bounds = array<i64: 256, 512>}, {pipeline_mode = #tpu.pipeline_mode<synchronous>, transform_indices = @transform_2, window_bounds = array<i64: 1, 512>}, {pipeline_mode = #tpu.pipeline_mode<synchronous>, transform_indices = @transform_3, window_bounds = array<i64: 512, 512>}, {pipeline_mode = #tpu.pipeline_mode<synchronous>, transform_indices = @transform_4, window_bounds = array<i64: 1, 512>}, {pipeline_mode = #tpu.pipeline_mode<synchronous>, transform_indices = @transform_5, window_bounds = array<i64: 512, 128>}, {pipeline_mode = #tpu.pipeline_mode<synchronous>, transform_indices = @transform_6, window_bounds = array<i64: 1, 128>}, {transform_indices = @transform_7, window_bounds = array<i64: 16, 128>}]} {
    %c0 = arith.constant 0 : index
    %c0_0 = arith.constant 0 : index
    %0 = vector.load %arg1[%c0, %c0_0] : memref<16x256xbf16, #tpu.memory_space<vmem>>, vector<16x256xbf16>
    %c0_1 = arith.constant 0 : index
    %c0_2 = arith.constant 0 : index
    %1 = vector.load %arg2[%c0_1, %c0_2] : memref<256x512xbf16, #tpu.memory_space<vmem>>, vector<256x512xbf16>
    %cst = arith.constant dense<0.000000e+00> : vector<16x512xf32>
    %2 = tpu.matmul %0, %1, %cst {dimension_numbers = #tpu.dot_dimension_numbers<[1], [0], [0], [1], [0, 0, 1, 1], [], []>} : vector<16x256xbf16>, vector<256x512xbf16>, vector<16x512xf32> -> vector<16x512xf32>
    %c0_3 = arith.constant 0 : index
    %c0_4 = arith.constant 0 : index
    %3 = vector.load %arg3[%c0_3, %c0_4] : memref<1x512xf32, #tpu.memory_space<vmem>>, vector<1x512xf32>
    %4 = vector.broadcast %3 : vector<1x512xf32> to vector<16x512xf32>
    %5 = arith.addf %2, %4 : vector<16x512xf32>
    %cst_5 = arith.constant 0.000000e+00 : f32
    %6 = vector.broadcast %cst_5 : f32 to vector<16x512xf32>
    %7 = arith.cmpf oge, %5, %6 : vector<16x512xf32>
    %cst_6 = arith.constant 2.000000e-01 : f32
    %8 = vector.broadcast %cst_6 : f32 to vector<16x512xf32>
    %9 = arith.mulf %8, %5 : vector<16x512xf32>
    %10 = arith.select %7, %5, %9 : vector<16x512xi1>, vector<16x512xf32>
    %11 = arith.truncf %10 : vector<16x512xf32> to vector<16x512xbf16>
    %c0_7 = arith.constant 0 : index
    %c0_8 = arith.constant 0 : index
    %12 = vector.load %arg4[%c0_7, %c0_8] : memref<512x512xbf16, #tpu.memory_space<vmem>>, vector<512x512xbf16>
    %cst_9 = arith.constant dense<0.000000e+00> : vector<16x512xf32>
    %13 = tpu.matmul %11, %12, %cst_9 {dimension_numbers = #tpu.dot_dimension_numbers<[1], [0], [0], [1], [0, 0, 1, 1], [], []>} : vector<16x512xbf16>, vector<512x512xbf16>, vector<16x512xf32> -> vector<16x512xf32>
    %c0_10 = arith.constant 0 : index
    %c0_11 = arith.constant 0 : index
    %14 = vector.load %arg5[%c0_10, %c0_11] : memref<1x512xf32, #tpu.memory_space<vmem>>, vector<1x512xf32>
    %15 = vector.broadcast %14 : vector<1x512xf32> to vector<16x512xf32>
    %16 = arith.addf %13, %15 : vector<16x512xf32>
    %cst_12 = arith.constant 0.000000e+00 : f32
    %17 = vector.broadcast %cst_12 : f32 to vector<16x512xf32>
    %18 = arith.cmpf oge, %16, %17 : vector<16x512xf32>
    %cst_13 = arith.constant 2.000000e-01 : f32
    %19 = vector.broadcast %cst_13 : f32 to vector<16x512xf32>
    %20 = arith.mulf %19, %16 : vector<16x512xf32>
    %21 = arith.select %18, %16, %20 : vector<16x512xi1>, vector<16x512xf32>
    %22 = arith.truncf %21 : vector<16x512xf32> to vector<16x512xbf16>
    %c0_14 = arith.constant 0 : index
    %c0_15 = arith.constant 0 : index
    %23 = vector.load %arg6[%c0_14, %c0_15] : memref<512x128xbf16, #tpu.memory_space<vmem>>, vector<512x128xbf16>
    %cst_16 = arith.constant dense<0.000000e+00> : vector<16x128xf32>
    %24 = tpu.matmul %22, %23, %cst_16 {dimension_numbers = #tpu.dot_dimension_numbers<[1], [0], [0], [1], [0, 0, 1, 1], [], []>} : vector<16x512xbf16>, vector<512x128xbf16>, vector<16x128xf32> -> vector<16x128xf32>
    %c0_17 = arith.constant 0 : index
    %c0_18 = arith.constant 0 : index
    %25 = vector.load %arg7[%c0_17, %c0_18] : memref<1x128xf32, #tpu.memory_space<vmem>>, vector<1x128xf32>
    %26 = vector.broadcast %25 : vector<1x128xf32> to vector<16x128xf32>
    %27 = arith.addf %24, %26 : vector<16x128xf32>
    %c0_19 = arith.constant 0 : index
    %c0_20 = arith.constant 0 : index
    %28 = vector.load %arg8[%c0_19, %c0_20] : memref<16x128xf32, #tpu.memory_space<vmem>>, vector<16x128xf32>
    tpu.vector_store %arg8[%c0_19, %c0_20], %27 {strides = array<i32>} : memref<16x128xf32, #tpu.memory_space<vmem>>, vector<16x128xf32>,
    return
  }
  func.func @transform_0(%arg0: i32) -> (i32, i32) {
    %c0_i32 = arith.constant 0 : i32
    %c0_i32_0 = arith.constant 0 : i32
    return %arg0, %c0_i32 : i32, i32
  }
  func.func @transform_1(%arg0: i32) -> (i32, i32) {
    %c0_i32 = arith.constant 0 : i32
    %c0_i32_0 = arith.constant 0 : i32
    %c0_i32_1 = arith.constant 0 : i32
    return %c0_i32, %c0_i32_0 : i32, i32
  }
  func.func @transform_2(%arg0: i32) -> (i32, i32) {
    %c0_i32 = arith.constant 0 : i32
    %c0_i32_0 = arith.constant 0 : i32
    %c0_i32_1 = arith.constant 0 : i32
    return %c0_i32, %c0_i32_0 : i32, i32
  }
  func.func @transform_3(%arg0: i32) -> (i32, i32) {
    %c0_i32 = arith.constant 0 : i32
    %c0_i32_0 = arith.constant 0 : i32
    %c0_i32_1 = arith.constant 0 : i32
    return %c0_i32, %c0_i32_0 : i32, i32
  }
  func.func @transform_4(%arg0: i32) -> (i32, i32) {
    %c0_i32 = arith.constant 0 : i32
    %c0_i32_0 = arith.constant 0 : i32
    %c0_i32_1 = arith.constant 0 : i32
    return %c0_i32, %c0_i32_0 : i32, i32
  }
  func.func @transform_5(%arg0: i32) -> (i32, i32) {
    %c0_i32 = arith.constant 0 : i32
    %c0_i32_0 = arith.constant 0 : i32
    %c0_i32_1 = arith.constant 0 : i32
    return %c0_i32, %c0_i32_0 : i32, i32
  }
  func.func @transform_6(%arg0: i32) -> (i32, i32) {
    %c0_i32 = arith.constant 0 : i32
    %c0_i32_0 = arith.constant 0 : i32
    %c0_i32_1 = arith.constant 0 : i32
    return %c0_i32, %c0_i32_0 : i32, i32
  }
  func.func @transform_7(%arg0: i32) -> (i32, i32) {
    %c0_i32 = arith.constant 0 : i32
    %c0_i32_0 = arith.constant 0 : i32
    return %arg0, %c0_i32 : i32, i32
  }
}

</mosaic_0001>

<bundles_post_ra>
// kernel: tpu_custom_call.1
= control target key start
LH: loop header
LB: loop body
LE: loop exit
PB: predicated region body
PF: predicated region fallthrough
CT: control target
= control target key end

     0   :  { %12 = vsyncpa [#allocation3], 0  ;;  %s2877_s0 = inlined_call_operand.hbm [shape: bf16[16,256], index: 0, kind: input, shape index: {}]   ;;  %s2878_s1 = inlined_call_operand.hbm [shape: bf16[256,512], index: 1, kind: input, shape index: {}]   ;;  %s2879_s2 = inlined_call_operand.vmem [shape: f32[1,512], index: 2, kind: input, shape index: {}]   ;;  %s2880_s3 = inlined_call_operand.hbm [shape: bf16[512,512], index: 3, kind: input, shape index: {}]   ;;  %s2881_s4 = inlined_call_operand.vmem [shape: f32[1,512], index: 4, kind: input, shape index: {}]   ;;  %s2882_s5 = inlined_call_operand.hbm [shape: bf16[512,128], index: 5, kind: input, shape index: {}]   ;;  %s2883_s6 = inlined_call_operand.vmem [shape: f32[1,128], index: 6, kind: input, shape index: {}]   ;;  %s2884_s7 = inlined_call_operand.hbm [shape: f32[16,128], index: 7, kind: output, shape index: {}]  }
   0x1   :  { %13 = vsyncpa [#allocation6], 0 }
   0x2   :  { %14 = vsyncpa [#allocation9], 0 }
   0x3   :  { %15 = vsyncpa [#allocation4], 0  ;;  %s2710_s24 = smov [#allocation5]   ;;  %s2592_s28 = scalar_lea.hbm %s2878_s1, 8192 }
   0x4   :  { %s33_s25 = sshll.u32 %s2710_s24, 4  ;;  %p2593_p0 = scmp.ne.s32.totalorder %s2878_s1, %s2592_s28  ;;  %s34_s25 = int_to_ptr.vmem [resolvable:$true] %s33_s25 }
   0x5   :  { %p2596_p1 = scmp.lt.u32.totalorder %s2592_s28, %s2878_s1 }
   0x7   :  { %p2598_p2 = pnand %p2596_p1, %p2593_p0 }
   0x9   :  { %2601 = shalt.err (!%p2598_p2)
}
   0xa   :  { %s2602_s10 = scalar_lea.vmem %s34_s25, 8192  ;;  %p2607_p4 = scmp.lt.s32.totalorder %s34_s25, %s34_s25 }
   0xb   :  { %p2603_p3 = scmp.ne.s32.totalorder %s34_s25, %s2602_s10  ;;  %p2608_p5 = scmp.lt.s32.totalorder %s2602_s10, %s2602_s10 }
   0xd   :  { %p2609_p6 = por %p2608_p5, %p2607_p4 }
   0xf   :  { %p2610_p7 = pnand %p2609_p6, %p2603_p3 }
  0x11   :  { %2613 = shalt.err (!%p2610_p7)
}
  0x12   :  { %s2711_s11 = smov 256   ;;  %s2712_s12 = smov 16  }
  0x13   :  { %39 = dma.hbm_to_vmem [thread:$0]  %s2878_s1, 8192, %s34_s25, [#allocation6], %s2711_s11, %s2711_s11, %s2712_s12  }
  0x14   :  { %s2713_s15 = smov [#allocation2]   ;;  %s2614_s19 = scalar_lea.hbm %s2877_s0, 256 }
  0x15   :  { %s21_s16 = sshll.u32 %s2713_s15, 4  ;;  %p2615_p8 = scmp.ne.s32.totalorder %s2877_s0, %s2614_s19  ;;  %s22_s16 = int_to_ptr.vmem [resolvable:$true] %s21_s16 }
  0x16   :  { %p2618_p9 = scmp.lt.u32.totalorder %s2614_s19, %s2877_s0 }
  0x18   :  { %p2620_p10 = pnand %p2618_p9, %p2615_p8 }
  0x1a   :  { %2623 = shalt.err (!%p2620_p10)
}
  0x1b   :  { %s2624_s24 = scalar_lea.vmem %s22_s16, 256  ;;  %p2629_p12 = scmp.lt.s32.totalorder %s22_s16, %s22_s16 }
  0x1c   :  { %p2625_p11 = scmp.ne.s32.totalorder %s22_s16, %s2624_s24  ;;  %p2630_p13 = scmp.lt.s32.totalorder %s2624_s24, %s2624_s24 }
  0x1e   :  { %p2631_p0 = por %p2630_p13, %p2629_p12 }
  0x20   :  { %p2632_p1 = pnand %p2631_p0, %p2625_p11 }
  0x22   :  { %2635 = shalt.err (!%p2632_p1)
}
  0x23   :  { %s2714_s1 = smov 128   ;;  %s2715_s25 = smov 8  }
  0x24   :  { %27 = dma.hbm_to_vmem [thread:$0]  %s2877_s0, 256, %s22_s16, [#allocation3], %s2714_s1, %s2714_s1, %s2715_s25  }
  0x25   :  { %s2716_s28 = smov [#allocation7]   ;;  %s2717_s30 = smov [#allocation8]  }
  0x26   :  { %s47_s29 = sshll.u32 %s2716_s28, 4  ;;  %s61_s8 = sshll.u32 %s2717_s30, 4  ;;  %s48_s29 = int_to_ptr.vmem [resolvable:$true] %s47_s29  ;;  %s2791_s8 = int_to_ptr.vmem [resolvable:$true] %s61_s8 }
  0x27   :  { %s2636_s13 = scalar_lea.hbm %s2880_s3, 16384 }
  0x28   :  { %p2637_p2 = scmp.ne.s32.totalorder %s2880_s3, %s2636_s13  ;;  %p2640_p3 = scmp.lt.u32.totalorder %s2636_s13, %s2880_s3 }
  0x2a   :  { %p2642_p4 = pnand %p2640_p3, %p2637_p2 }
  0x2c   :  { %2645 = shalt.err (!%p2642_p4)
}
  0x2d   :  { %s2646_s0 = scalar_lea.vmem %s48_s29, 16384  ;;  %p2651_p6 = scmp.lt.s32.totalorder %s48_s29, %s48_s29 }
  0x2e   :  { %p2647_p5 = scmp.ne.s32.totalorder %s48_s29, %s2646_s0  ;;  %p2652_p7 = scmp.lt.s32.totalorder %s2646_s0, %s2646_s0 }
  0x30   :  { %p2653_p8 = por %p2652_p7, %p2651_p6 }
  0x32   :  { %p2654_p9 = pnand %p2653_p8, %p2647_p5 }
  0x34   :  { %2657 = shalt.err (!%p2654_p9)
}
  0x35   :  { %53 = dma.hbm_to_vmem [thread:$0]  %s2880_s3, 16384, %s48_s29, [#allocation6], %s2711_s11, %s2711_s11, %s2712_s12  }
  0x36   :  { %s2658_s22 = scalar_lea.hbm %s2882_s5, 4096 }
  0x37   :  { %p2659_p10 = scmp.ne.s32.totalorder %s2882_s5, %s2658_s22  ;;  %p2662_p11 = scmp.lt.u32.totalorder %s2658_s22, %s2882_s5 }
  0x39   :  { %p2664_p12 = pnand %p2662_p11, %p2659_p10 }
  0x3b   :  { %2667 = shalt.err (!%p2664_p12)
}
  0x3c   :  { %s2668_s28 = scalar_lea.vmem %s2791_s8, 4096  ;;  %p2673_p0 = scmp.lt.s32.totalorder %s2791_s8, %s2791_s8 }
  0x3d   :  { %p2669_p13 = scmp.ne.s32.totalorder %s2791_s8, %s2668_s28  ;;  %p2674_p1 = scmp.lt.s32.totalorder %s2668_s28, %s2668_s28 }
  0x3f   :  { %p2675_p2 = por %p2674_p1, %p2673_p0 }
  0x41   :  { %p2676_p3 = pnand %p2675_p2, %p2669_p13 }
  0x43   :  { %2679 = shalt.err (!%p2676_p3)
}
  0x44   :  { %s2718_s3 = smov 64   ;;  %s2719_s11 = smov 4  }
  0x45   :  { %67 = dma.hbm_to_vmem [thread:$0]  %s2882_s5, 4096, %s2791_s8, [#allocation9], %s2718_s3, %s2718_s3, %s2719_s11  }
  0x46   :  { %2702 = dma.done.wait [#allocation3], 256  }
  0x47   :  { %2703 = vsyncadd [#allocation3], 4294967040 }
  0x48   :  { %2704 = dma.done.wait [#allocation6], 24576  }
  0x49   :  { %2705 = vsyncadd [#allocation6], 4294942720 }
  0x4a   :  { %2706 = dma.done.wait [#allocation9], 4096  }
  0x4b   :  { %2707 = vsyncadd [#allocation9], 4294963200  ;;  %v2269_v0 = vld [vmem:[#allocation5 + $0x4] ss:$16 sps:$4 sm:$0xff]   ;;  %v2271_v1 = vld [vmem:[#allocation5] ss:$16 sps:$4 sm:$0xff]  }
  0x4c   :  { %501 = vmatprep.subr.bf16.mxu0 %v2269_v0  ;;  %v2272_v2 = vld [vmem:[#allocation5 + $0x24] ss:$16 sps:$4 sm:$0xff]   ;;  %v2274_v3 = vld [vmem:[#allocation5 + $0x20] ss:$16 sps:$4 sm:$0xff]   ;;  %v2314_v13 = vld [vmem:[#allocation5 + $0xc] ss:$16 sps:$4 sm:$0xff]  }
  0x4d   :  { %502 = vmatpush1.bf16.msra.mxu0 %v2271_v1  ;;  %v2275_v4 = vld [vmem:[#allocation5 + $0x44] ss:$16 sps:$4 sm:$0xff]   ;;  %v2277_v5 = vld [vmem:[#allocation5 + $0x40] ss:$16 sps:$4 sm:$0xff]   ;;  %v2316_v14 = vld [vmem:[#allocation5 + $0x8] ss:$16 sps:$4 sm:$0xff]   ;;  %544 = vmatprep.subr.bf16.mxu1 %v2314_v13 }
  0x4e   :  { %503 = vmatprep.subr.bf16.mxu0 %v2272_v2  ;;  %v2278_v6 = vld [vmem:[#allocation5 + $0x64] ss:$16 sps:$4 sm:$0xff]   ;;  %v2280_v7 = vld [vmem:[#allocation5 + $0x60] ss:$16 sps:$4 sm:$0xff]   ;;  %545 = vmatpush1.bf16.msra.mxu1 %v2316_v14  ;;  %v2320_v16 = vld [vmem:[#allocation5 + $0x2c] ss:$16 sps:$4 sm:$0xff]  }
  0x4f   :  { %v2281_v8 = vld [vmem:[#allocation5 + $0x84] ss:$16 sps:$4 sm:$0xff]   ;;  %v2283_v9 = vld [vmem:[#allocation5 + $0x80] ss:$16 sps:$4 sm:$0xff]   ;;  %546 = vmatprep.subr.bf16.mxu1 %v2320_v16  ;;  %v2325_v19 = vld [vmem:[#allocation5 + $0x28] ss:$16 sps:$4 sm:$0xff]  }
  0x50   :  { %v2284_v10 = vld [vmem:[#allocation5 + $0xa4] ss:$16 sps:$4 sm:$0xff]   ;;  %v2286_v11 = vld [vmem:[#allocation5 + $0xa0] ss:$16 sps:$4 sm:$0xff]   ;;  %v2326_v21 = vld [vmem:[#allocation5 + $0x4c] ss:$16 sps:$4 sm:$0xff]  }
  0x51   :  { %504 = vmatpush1.bf16.msra.mxu0 %v2274_v3  ;;  %v2287_v12 = vld [vmem:[#allocation5 + $0xc4] ss:$16 sps:$4 sm:$0xff]   ;;  %v2289_v15 = vld [vmem:[#allocation5 + $0xc0] ss:$16 sps:$4 sm:$0xff]   ;;  %v2328_v23 = vld [vmem:[#allocation5 + $0x48] ss:$16 sps:$4 sm:$0xff]  }
  0x52   :  { %505 = vmatprep.subr.bf16.mxu0 %v2275_v4  ;;  %v2290_v17 = vld [vmem:[#allocation5 + $0xe4] ss:$16 sps:$4 sm:$0xff]   ;;  %v2292_v20 = vld [vmem:[#allocation5 + $0xe0] ss:$16 sps:$4 sm:$0xff]   ;;  %547 = vmatpush1.bf16.msra.mxu1 %v2325_v19  ;;  %v2329_v24 = vld [vmem:[#allocation5 + $0x6c] ss:$16 sps:$4 sm:$0xff]  }
  0x53   :  { %v2324_v18 = vld [vmem:[#allocation2 + $0x4] ss:$8 sps:$4 sm:$0xff]   ;;  %548 = vmatprep.subr.bf16.mxu1 %v2326_v21  ;;  %v2295_v25 = vld [vmem:[#allocation5 + $0x100] ss:$16 sps:$4 sm:$0xff]   ;;  %v2331_v27 = vld [vmem:[#allocation5 + $0x68] ss:$16 sps:$4 sm:$0xff]  }
  0x54   :  { %533 = vmatprep.mubr.bf16.mxu0 %v2324_v18  ;;  %576 = vmatprep.mubr.bf16.mxu1 %v2324_v18  ;;  %v2293_v22 = vld [vmem:[#allocation5 + $0x104] ss:$16 sps:$4 sm:$0xff]   ;;  %v2332_v28 = vld [vmem:[#allocation5 + $0x8c] ss:$16 sps:$4 sm:$0xff]   ;;  %v2298_v29 = vld [vmem:[#allocation5 + $0x120] ss:$16 sps:$4 sm:$0xff]  }
  0x55   :  { %506 = vmatpush1.bf16.msra.mxu0 %v2277_v5  ;;  %v2296_v26 = vld [vmem:[#allocation5 + $0x124] ss:$16 sps:$4 sm:$0xff]   ;;  %v2334_v31 = vld [vmem:[#allocation5 + $0x88] ss:$16 sps:$4 sm:$0xff]   ;;  %v2335_v32 = vld [vmem:[#allocation5 + $0xac] ss:$16 sps:$4 sm:$0xff]  }
  0x56   :  { %507 = vmatprep.subr.bf16.mxu0 %v2278_v6  ;;  %549 = vmatpush1.bf16.msra.mxu1 %v2328_v23  ;;  %v2299_v30 = vld [vmem:[#allocation5 + $0x144] ss:$16 sps:$4 sm:$0xff]   ;;  %v2301_v33 = vld [vmem:[#allocation5 + $0x140] ss:$16 sps:$4 sm:$0xff]   ;;  %v2337_v35 = vld [vmem:[#allocation5 + $0xa8] ss:$16 sps:$4 sm:$0xff]  }
  0x57   :  { %550 = vmatprep.subr.bf16.mxu1 %v2329_v24  ;;  %v2302_v34 = vld [vmem:[#allocation5 + $0x164] ss:$16 sps:$4 sm:$0xff]   ;;  %v2338_v36 = vld [vmem:[#allocation5 + $0xcc] ss:$16 sps:$4 sm:$0xff]   ;;  %v2304_v37 = vld [vmem:[#allocation5 + $0x160] ss:$16 sps:$4 sm:$0xff]  }
  0x58   :  { %v2305_v38 = vld [vmem:[#allocation5 + $0x184] ss:$16 sps:$4 sm:$0xff]   ;;  %v2340_v39 = vld [vmem:[#allocation5 + $0xc8] ss:$16 sps:$4 sm:$0xff]   ;;  %v2341_v40 = vld [vmem:[#allocation5 + $0xec] ss:$16 sps:$4 sm:$0xff]  }
  0x59   :  { %508 = vmatpush1.bf16.msra.mxu0 %v2280_v7  ;;  %v2307_v41 = vld [vmem:[#allocation5 + $0x180] ss:$16 sps:$4 sm:$0xff]   ;;  %v2308_v42 = vld [vmem:[#allocation5 + $0x1a4] ss:$16 sps:$4 sm:$0xff]   ;;  %v2343_v43 = vld [vmem:[#allocation5 + $0xe8] ss:$16 sps:$4 sm:$0xff]  }
  0x5a   :  { %509 = vmatprep.subr.bf16.mxu0 %v2281_v8  ;;  %551 = vmatpush1.bf16.msra.mxu1 %v2331_v27  ;;  %v2344_v44 = vld [vmem:[#allocation5 + $0x10c] ss:$16 sps:$4 sm:$0xff]   ;;  %v2310_v45 = vld [vmem:[#allocation5 + $0x1a0] ss:$16 sps:$4 sm:$0xff]   ;;  %v2311_v46 = vld [vmem:[#allocation5 + $0x1c4] ss:$16 sps:$4 sm:$0xff]  }
  0x5b   :  { %552 = vmatprep.subr.bf16.mxu1 %v2332_v28  ;;  %v2346_v47 = vld [vmem:[#allocation5 + $0x108] ss:$16 sps:$4 sm:$0xff]   ;;  %v2347_v48 = vld [vmem:[#allocation5 + $0x12c] ss:$16 sps:$4 sm:$0xff]   ;;  %v2313_v49 = vld [vmem:[#allocation5 + $0x1c0] ss:$16 sps:$4 sm:$0xff]  }
  0x5c   :  { %v2317_v50 = vld [vmem:[#allocation5 + $0x1e4] ss:$16 sps:$4 sm:$0xff]   ;;  %v2349_v51 = vld [vmem:[#allocation5 + $0x128] ss:$16 sps:$4 sm:$0xff]   ;;  %v2350_v52 = vld [vmem:[#allocation5 + $0x14c] ss:$16 sps:$4 sm:$0xff]  }
  0x5d   :  { %510 = vmatpush1.bf16.msra.mxu0 %v2283_v9  ;;  %v2319_v53 = vld [vmem:[#allocation5 + $0x1e0] ss:$16 sps:$4 sm:$0xff]   ;;  %v2352_v54 = vld [vmem:[#allocation5 + $0x148] ss:$16 sps:$4 sm:$0xff]   ;;  %v2353_v55 = vld [vmem:[#allocation5 + $0x16c] ss:$16 sps:$4 sm:$0xff]  }
  0x5e   :  { %511 = vmatprep.subr.bf16.mxu0 %v2284_v10  ;;  %553 = vmatpush1.bf16.msra.mxu1 %v2334_v31  ;;  %v2370_v56 = vld [vmem:[#allocation7 + $0x4] ss:$16 sps:$4 sm:$0xff]   ;;  %v2322_v57 = vld [vmem:[#allocation2] ss:$8 sps:$4 sm:$0xff]   ;;  %v2356_v59 = vld [vmem:[#allocation5 + $0x18c] ss:$16 sps:$4 sm:$0xff]  }
  0x5f   :  { %554 = vmatprep.subr.bf16.mxu1 %v2335_v32  ;;  %v2355_v58 = vld [vmem:[#allocation5 + $0x168] ss:$16 sps:$4 sm:$0xff]   ;;  %v2368_v60 = vld [vmem:[#allocation7] ss:$16 sps:$4 sm:$0xff]   ;;  %v2376_v61 = vld [vmem:[#allocation7 + $0x24] ss:$16 sps:$4 sm:$0xff]  }
  0x60   :  { %v2358_v62 = vld [vmem:[#allocation5 + $0x188] ss:$16 sps:$4 sm:$0xff]   ;;  %v2359_v63 = vld [vmem:[#allocation5 + $0x1ac] ss:$16 sps:$4 sm:$0xff]   ;;  %v2374_v0 = vld [vmem:[#allocation7 + $0x20] ss:$16 sps:$4 sm:$0xff]  }
  0x61   :  { %512 = vmatpush1.bf16.msra.mxu0 %v2286_v11  ;;  %v2382_v1 = vld [vmem:[#allocation7 + $0x44] ss:$16 sps:$4 sm:$0xff]   ;;  %v2361_v2 = vld [vmem:[#allocation5 + $0x1a8] ss:$16 sps:$4 sm:$0xff]   ;;  %v2362_v3 = vld [vmem:[#allocation5 + $0x1cc] ss:$16 sps:$4 sm:$0xff]  }
  0x62   :  { %513 = vmatprep.subr.bf16.mxu0 %v2287_v12  ;;  %555 = vmatpush1.bf16.msra.mxu1 %v2337_v35  ;;  %v2380_v4 = vld [vmem:[#allocation7 + $0x40] ss:$16 sps:$4 sm:$0xff]   ;;  %v2388_v5 = vld [vmem:[#allocation7 + $0x64] ss:$16 sps:$4 sm:$0xff]   ;;  %v2364_v6 = vld [vmem:[#allocation5 + $0x1c8] ss:$16 sps:$4 sm:$0xff]  }
  0x63   :  { %556 = vmatprep.subr.bf16.mxu1 %v2338_v36  ;;  %v2365_v7 = vld [vmem:[#allocation5 + $0x1ec] ss:$16 sps:$4 sm:$0xff]   ;;  %v2386_v8 = vld [vmem:[#allocation7 + $0x60] ss:$16 sps:$4 sm:$0xff]   ;;  %v2394_v9 = vld [vmem:[#allocation7 + $0x84] ss:$16 sps:$4 sm:$0xff]  }
  0x64   :  { %v2367_v10 = vld [vmem:[#allocation5 + $0x1e8] ss:$16 sps:$4 sm:$0xff]   ;;  %v2373_v11 = vld [vmem:[#allocation7 + $0xc] ss:$16 sps:$4 sm:$0xff]   ;;  %v2392_v12 = vld [vmem:[#allocation7 + $0x80] ss:$16 sps:$4 sm:$0xff]  }
  0x65   :  { %514 = vmatpush1.bf16.msra.mxu0 %v2289_v15  ;;  %v2400_v13 = vld [vmem:[#allocation7 + $0xa4] ss:$16 sps:$4 sm:$0xff]   ;;  %v2371_v14 = vld [vmem:[#allocation7 + $0x8] ss:$16 sps:$4 sm:$0xff]   ;;  %v2398_v15 = vld [vmem:[#allocation7 + $0xa0] ss:$16 sps:$4 sm:$0xff]  }
  0x66   :  { %515 = vmatprep.subr.bf16.mxu0 %v2290_v17  ;;  %557 = vmatpush1.bf16.msra.mxu1 %v2340_v39  ;;  %v2379_v16 = vld [vmem:[#allocation7 + $0x2c] ss:$16 sps:$4 sm:$0xff]   ;;  %v2406_v17 = vld [vmem:[#allocation7 + $0xc4] ss:$16 sps:$4 sm:$0xff]   ;;  %v2377_v18 = vld [vmem:[#allocation7 + $0x28] ss:$16 sps:$4 sm:$0xff]  }
  0x67   :  { %558 = vmatprep.subr.bf16.mxu1 %v2341_v40  ;;  %v2404_v19 = vld [vmem:[#allocation7 + $0xc0] ss:$16 sps:$4 sm:$0xff]   ;;  %v2412_v21 = vld [vmem:[#allocation7 + $0xe4] ss:$16 sps:$4 sm:$0xff]   ;;  %v2391_v24 = vld [vmem:[#allocation7 + $0x6c] ss:$16 sps:$4 sm:$0xff]  }
  0x68   :  { %v2410_v23 = vld [vmem:[#allocation7 + $0xe0] ss:$16 sps:$4 sm:$0xff]   ;;  %v2397_v28 = vld [vmem:[#allocation7 + $0x8c] ss:$16 sps:$4 sm:$0xff]   ;;  %s2720_s10 = smov [#allocation10]  }
  0x69   :  { %516 = vmatpush1.bf16.msra.mxu0 %v2292_v20  ;;  %v2385_v20 = vld [vmem:[#allocation7 + $0x4c] ss:$16 sps:$4 sm:$0xff]   ;;  %v2416_v27 = vld [vmem:[#allocation7 + $0x100] ss:$16 sps:$4 sm:$0xff]   ;;  %s1957_s13 = sshll.u32 %s2720_s10, 4  ;;  %s1958_s13 = int_to_ptr.vmem [resolvable:$true] %s1957_s13 }
  0x6a   :  { %517 = vmatprep.subr.bf16.mxu0 %v2293_v22  ;;  %559 = vmatpush1.bf16.msra.mxu1 %v2343_v43  ;;  %v2383_v22 = vld [vmem:[#allocation7 + $0x48] ss:$16 sps:$4 sm:$0xff]   ;;  %v2422_v31 = vld [vmem:[#allocation7 + $0x120] ss:$16 sps:$4 sm:$0xff]   ;;  %v2403_v32 = vld [vmem:[#allocation7 + $0xac] ss:$16 sps:$4 sm:$0xff]   ;;  %p2685_p5 = scmp.lt.s32.totalorder %s1958_s13, %s1958_s13 }
  0x6b   :  { %560 = vmatprep.subr.bf16.mxu1 %v2344_v44  ;;  %v2428_v35 = vld [vmem:[#allocation7 + $0x140] ss:$16 sps:$4 sm:$0xff]   ;;  %v2409_v36 = vld [vmem:[#allocation7 + $0xcc] ss:$16 sps:$4 sm:$0xff]  }
  0x6c   :  { %v2434_v39 = vld [vmem:[#allocation7 + $0x160] ss:$16 sps:$4 sm:$0xff]   ;;  %v2415_v40 = vld [vmem:[#allocation7 + $0xec] ss:$16 sps:$4 sm:$0xff]  }
  0x6d   :  { %518 = vmatpush1.bf16.msra.mxu0 %v2295_v25  ;;  %v2418_v25 = vld [vmem:[#allocation7 + $0x104] ss:$16 sps:$4 sm:$0xff]   ;;  %v2440_v43 = vld [vmem:[#allocation7 + $0x180] ss:$16 sps:$4 sm:$0xff]   ;;  %v2421_v44 = vld [vmem:[#allocation7 + $0x10c] ss:$16 sps:$4 sm:$0xff]  }
  0x6e   :  { %519 = vmatprep.subr.bf16.mxu0 %v2296_v26  ;;  %561 = vmatpush1.bf16.msra.mxu1 %v2346_v47  ;;  %v2389_v26 = vld [vmem:[#allocation7 + $0x68] ss:$16 sps:$4 sm:$0xff]   ;;  %v2446_v47 = vld [vmem:[#allocation7 + $0x1a0] ss:$16 sps:$4 sm:$0xff]  }
  0x6f   :  { %562 = vmatprep.subr.bf16.mxu1 %v2347_v48  ;;  %v2427_v48 = vld [vmem:[#allocation7 + $0x12c] ss:$16 sps:$4 sm:$0xff]  }
  0x71   :  { %520 = vmatpush1.bf16.msra.mxu0 %v2298_v29  ;;  %v2424_v29 = vld [vmem:[#allocation7 + $0x124] ss:$16 sps:$4 sm:$0xff]  }
  0x72   :  { %521 = vmatprep.subr.bf16.mxu0 %v2299_v30  ;;  %563 = vmatpush1.bf16.msra.mxu1 %v2349_v51  ;;  %v2395_v30 = vld [vmem:[#allocation7 + $0x88] ss:$16 sps:$4 sm:$0xff]  }
  0x73   :  { %564 = vmatprep.subr.bf16.mxu1 %v2350_v52  ;;  %v2431_v51 = vld [vmem:[#allocation7 + $0x148] ss:$16 sps:$4 sm:$0xff]   ;;  %v2439_v52 = vld [vmem:[#allocation7 + $0x16c] ss:$16 sps:$4 sm:$0xff]  }
  0x75   :  { %522 = vmatpush1.bf16.msra.mxu0 %v2301_v33  ;;  %v2430_v33 = vld [vmem:[#allocation7 + $0x144] ss:$16 sps:$4 sm:$0xff]  }
  0x76   :  { %523 = vmatprep.subr.bf16.mxu0 %v2302_v34  ;;  %565 = vmatpush1.bf16.msra.mxu1 %v2352_v54  ;;  %v2401_v34 = vld [vmem:[#allocation7 + $0xa8] ss:$16 sps:$4 sm:$0xff]   ;;  %v2445_v54 = vld [vmem:[#allocation7 + $0x18c] ss:$16 sps:$4 sm:$0xff]  }
  0x77   :  { %566 = vmatprep.subr.bf16.mxu1 %v2353_v55  ;;  %v2443_v55 = vld [vmem:[#allocation7 + $0x188] ss:$16 sps:$4 sm:$0xff]  }
  0x79   :  { %524 = vmatpush1.bf16.msra.mxu0 %v2304_v37  ;;  %v2436_v37 = vld [vmem:[#allocation7 + $0x164] ss:$16 sps:$4 sm:$0xff]  }
  0x7a   :  { %525 = vmatprep.subr.bf16.mxu0 %v2305_v38  ;;  %567 = vmatpush1.bf16.msra.mxu1 %v2355_v58  ;;  %v2407_v38 = vld [vmem:[#allocation7 + $0xc8] ss:$16 sps:$4 sm:$0xff]   ;;  %v2454_v58 = vld [vmem:[#allocation7 + $0x1c4] ss:$16 sps:$4 sm:$0xff]  }
  0x7b   :  { %568 = vmatprep.subr.bf16.mxu1 %v2356_v59  ;;  %v2457_v59 = vld [vmem:[#allocation7 + $0x1cc] ss:$16 sps:$4 sm:$0xff]  }
  0x7d   :  { %526 = vmatpush1.bf16.msra.mxu0 %v2307_v41  ;;  %v2442_v41 = vld [vmem:[#allocation7 + $0x184] ss:$16 sps:$4 sm:$0xff]  }
  0x7e   :  { %527 = vmatprep.subr.bf16.mxu0 %v2308_v42  ;;  %569 = vmatpush1.bf16.msra.mxu1 %v2358_v62  ;;  %v2413_v42 = vld [vmem:[#allocation7 + $0xe8] ss:$16 sps:$4 sm:$0xff]   ;;  %v2460_v62 = vld [vmem:[#allocation7 + $0x1e4] ss:$16 sps:$4 sm:$0xff]  }
  0x7f   :  { %570 = vmatprep.subr.bf16.mxu1 %v2359_v63  ;;  %v2463_v63 = vld [vmem:[#allocation7 + $0x1ec] ss:$16 sps:$4 sm:$0xff]  }
  0x81   :  { %528 = vmatpush1.bf16.msra.mxu0 %v2310_v45  ;;  %v2448_v45 = vld [vmem:[#allocation7 + $0x1a4] ss:$16 sps:$4 sm:$0xff]  }
  0x82   :  { %529 = vmatprep.subr.bf16.mxu0 %v2311_v46  ;;  %571 = vmatpush1.bf16.msra.mxu1 %v2361_v2  ;;  %v2419_v46 = vld [vmem:[#allocation7 + $0x108] ss:$16 sps:$4 sm:$0xff]   ;;  %v2466_v2 = vld [vmem:[#allocation7 + $0x204] ss:$16 sps:$4 sm:$0xff]  }
  0x83   :  { %572 = vmatprep.subr.bf16.mxu1 %v2362_v3  ;;  %v2469_v3 = vld [vmem:[#allocation7 + $0x20c] ss:$16 sps:$4 sm:$0xff]  }
  0x85   :  { %530 = vmatpush1.bf16.msra.mxu0 %v2313_v49  ;;  %v2425_v49 = vld [vmem:[#allocation7 + $0x128] ss:$16 sps:$4 sm:$0xff]  }
  0x86   :  { %531 = vmatprep.subr.bf16.mxu0 %v2317_v50  ;;  %573 = vmatpush1.bf16.msra.mxu1 %v2364_v6  ;;  %v2433_v50 = vld [vmem:[#allocation7 + $0x14c] ss:$16 sps:$4 sm:$0xff]  }
  0x87   :  { %574 = vmatprep.subr.bf16.mxu1 %v2365_v7  ;;  %v149_v7 = vld [vmem:[%s2879_s2] sm:$0xf] }
  0x89   :  { %532 = vmatpush1.bf16.msra.mxu0 %v2319_v53  ;;  %v2437_v53 = vld [vmem:[#allocation7 + $0x168] ss:$16 sps:$4 sm:$0xff]  }
  0x8a   :  { %1405 = vmatprep.subr.bf16.mxu0 %v2370_v56  ;;  %575 = vmatpush1.bf16.msra.mxu1 %v2367_v10  ;;  %v2451_v56 = vld [vmem:[#allocation7 + $0x1ac] ss:$16 sps:$4 sm:$0xff]  }
  0x8b   :  { %1491 = vmatprep.subr.bf16.mxu1 %v2373_v11 }
  0x8c   :  { %534 = vmatmul.mubr.bf16.vlgmr.msra.gmra.mrb[0].mxu0 %v2322_v57 }
  0x8d   :  { %1406 = vmatpush1.bf16.msra.mxu0 %v2368_v60  ;;  %577 = vmatmul.mubr.bf16.vlgmr.msra.gmra.mrb[0].mxu1 %v2322_v57  ;;  %v2449_v57 = vld [vmem:[#allocation7 + $0x1a8] ss:$16 sps:$4 sm:$0xff]   ;;  %v2452_v60 = vld [vmem:[#allocation7 + $0x1c0] ss:$16 sps:$4 sm:$0xff]  }
  0x8e   :  { %1407 = vmatprep.subr.bf16.mxu0 %v2376_v61  ;;  %1492 = vmatpush1.bf16.msra.mxu1 %v2371_v14  ;;  %v2455_v61 = vld [vmem:[#allocation7 + $0x1c8] ss:$16 sps:$4 sm:$0xff]  }
  0x8f   :  { %1493 = vmatprep.subr.bf16.mxu1 %v2379_v16 }
  0x91   :  { %1408 = vmatpush1.bf16.msra.mxu0 %v2374_v0  ;;  %v2458_v0 = vld [vmem:[#allocation7 + $0x1e0] ss:$16 sps:$4 sm:$0xff]  }
  0x92   :  { %1409 = vmatprep.subr.bf16.mxu0 %v2382_v1  ;;  %1494 = vmatpush1.bf16.msra.mxu1 %v2377_v18  ;;  %v2461_v1 = vld [vmem:[#allocation7 + $0x1e8] ss:$16 sps:$4 sm:$0xff]  }
  0x93   :  { %1495 = vmatprep.subr.bf16.mxu1 %v2385_v20 }
  0x95   :  { %1410 = vmatpush1.bf16.msra.mxu0 %v2380_v4  ;;  %v151_v4 = vlaneseq }
  0x96   :  { %1411 = vmatprep.subr.bf16.mxu0 %v2388_v5  ;;  %1496 = vmatpush1.bf16.msra.mxu1 %v2383_v22 }
  0x97   :  { %1497 = vmatprep.subr.bf16.mxu1 %v2391_v24  ;;  %v2825_v5 = vshrl.u32 %v151_v4, 7 }
  0x99   :  { %1412 = vmatpush1.bf16.msra.mxu0 %v2386_v8  ;;  %v153_v6 = vsub.s32 0, %v2825_v5  ;;  %v157_v8 = vsub.s32 1, %v2825_v5 }
  0x9a   :  { %1413 = vmatprep.subr.bf16.mxu0 %v2394_v9  ;;  %1498 = vmatpush1.bf16.msra.mxu1 %v2389_v26 }
  0x9b   :  { %1499 = vmatprep.subr.bf16.mxu1 %v2397_v28  ;;  %v154_v9 = vrot.slane %v149_v7, %v153_v6  ;;  %v158_v10 = vrot.slane %v149_v7, %v157_v8 }
  0x9d   :  { %1414 = vmatpush1.bf16.msra.mxu0 %v2392_v12 }
  0x9e   :  { %1415 = vmatprep.subr.bf16.mxu0 %v2400_v13  ;;  %1500 = vmatpush1.bf16.msra.mxu1 %v2395_v30  ;;  %v2467_v30 = vld [vmem:[#allocation7 + $0x208] ss:$16 sps:$4 sm:$0xff]  }
  0x9f   :  { %1501 = vmatprep.subr.bf16.mxu1 %v2403_v32  ;;  %v2475_v32 = vld [vmem:[#allocation7 + $0x22c] ss:$16 sps:$4 sm:$0xff]  }
  0xa1   :  { %1416 = vmatpush1.bf16.msra.mxu0 %v2398_v15 }
  0xa2   :  { %1417 = vmatprep.subr.bf16.mxu0 %v2406_v17  ;;  %1502 = vmatpush1.bf16.msra.mxu1 %v2401_v34  ;;  %v2473_v34 = vld [vmem:[#allocation7 + $0x228] ss:$16 sps:$4 sm:$0xff]  }
  0xa3   :  { %1503 = vmatprep.subr.bf16.mxu1 %v2409_v36  ;;  %v2478_v36 = vld [vmem:[#allocation7 + $0x244] ss:$16 sps:$4 sm:$0xff]  }
  0xa5   :  { %1418 = vmatpush1.bf16.msra.mxu0 %v2404_v19 }
  0xa6   :  { %1419 = vmatprep.subr.bf16.mxu0 %v2412_v21  ;;  %1504 = vmatpush1.bf16.msra.mxu1 %v2407_v38  ;;  %v165_v38 = vsub.s32 3, %v2825_v5 }
  0xa7   :  { %1505 = vmatprep.subr.bf16.mxu1 %v2415_v40  ;;  %v2479_v40 = vld [vmem:[#allocation7 + $0x248] ss:$16 sps:$4 sm:$0xff]  }
  0xa9   :  { %1420 = vmatpush1.bf16.msra.mxu0 %v2410_v23 }
  0xaa   :  { %1421 = vmatprep.subr.bf16.mxu0 %v2418_v25  ;;  %1506 = vmatpush1.bf16.msra.mxu1 %v2413_v42  ;;  %v2484_v42 = vld [vmem:[#allocation7 + $0x264] ss:$16 sps:$4 sm:$0xff]  }
  0xab   :  { %1507 = vmatprep.subr.bf16.mxu1 %v2421_v44  ;;  %v166_v44 = vrot.slane %v149_v7, %v165_v38 }
  0xad   :  { %1422 = vmatpush1.bf16.msra.mxu0 %v2416_v27 }
  0xae   :  { %1423 = vmatprep.subr.bf16.mxu0 %v2424_v29  ;;  %1508 = vmatpush1.bf16.msra.mxu1 %v2419_v46  ;;  %v2464_v29 = vld [vmem:[#allocation7 + $0x200] ss:$16 sps:$4 sm:$0xff]  }
  0xaf   :  { %1509 = vmatprep.subr.bf16.mxu1 %v2427_v48  ;;  %v2482_v46 = vld [vmem:[#allocation7 + $0x260] ss:$16 sps:$4 sm:$0xff]  }
  0xb1   :  { %1424 = vmatpush1.bf16.msra.mxu0 %v2422_v31  ;;  %v2472_v31 = vld [vmem:[#allocation7 + $0x224] ss:$16 sps:$4 sm:$0xff]  }
  0xb2   :  { %1425 = vmatprep.subr.bf16.mxu0 %v2430_v33  ;;  %1510 = vmatpush1.bf16.msra.mxu1 %v2425_v49  ;;  %v2470_v33 = vld [vmem:[#allocation7 + $0x220] ss:$16 sps:$4 sm:$0xff]  }
  0xb3   :  { %1511 = vmatprep.subr.bf16.mxu1 %v2433_v50  ;;  %v2490_v50 = vld [vmem:[#allocation7 + $0x284] ss:$16 sps:$4 sm:$0xff]  }
  0xb5   :  { %1426 = vmatpush1.bf16.msra.mxu0 %v2428_v35  ;;  %v161_v35 = vsub.s32 2, %v2825_v5 }
  0xb6   :  { %1427 = vmatprep.subr.bf16.mxu0 %v2436_v37  ;;  %1512 = vmatpush1.bf16.msra.mxu1 %v2431_v51  ;;  %v2481_v37 = vld [vmem:[#allocation7 + $0x24c] ss:$16 sps:$4 sm:$0xff]  }
  0xb7   :  { %1513 = vmatprep.subr.bf16.mxu1 %v2439_v52  ;;  %v2493_v51 = vld [vmem:[#allocation7 + $0x28c] ss:$16 sps:$4 sm:$0xff]  }
  0xb9   :  { %1428 = vmatpush1.bf16.msra.mxu0 %v2434_v39  ;;  %v2476_v39 = vld [vmem:[#allocation7 + $0x240] ss:$16 sps:$4 sm:$0xff]  }
  0xba   :  { %1429 = vmatprep.subr.bf16.mxu0 %v2442_v41  ;;  %1514 = vmatpush1.bf16.msra.mxu1 %v2437_v53  ;;  %v162_v41 = vrot.slane %v149_v7, %v161_v35 }
  0xbb   :  { %1515 = vmatprep.subr.bf16.mxu1 %v2445_v54  ;;  %v2488_v54 = vld [vmem:[#allocation7 + $0x280] ss:$16 sps:$4 sm:$0xff]  }
  0xbd   :  { %1430 = vmatpush1.bf16.msra.mxu0 %v2440_v43  ;;  %v2487_v43 = vld [vmem:[#allocation7 + $0x26c] ss:$16 sps:$4 sm:$0xff]  }
  0xbe   :  { %1431 = vmatprep.subr.bf16.mxu0 %v2448_v45  ;;  %1516 = vmatpush1.bf16.msra.mxu1 %v2443_v55 }
  0xbf   :  { %1517 = vmatprep.subr.bf16.mxu1 %v2451_v56 }
  0xc1   :  { %1432 = vmatpush1.bf16.msra.mxu0 %v2446_v47  ;;  %v2485_v47 = vld [vmem:[#allocation7 + $0x268] ss:$16 sps:$4 sm:$0xff]  }
  0xc2   :  { %1518 = vmatpush1.bf16.msra.mxu1 %v2449_v57  ;;  %1433 = vmatprep.subr.bf16.mxu0 %v2454_v58  ;;  %v2491_v58 = vld [vmem:[#allocation7 + $0x288] ss:$16 sps:$4 sm:$0xff]  }
  0xc3   :  { %1519 = vmatprep.subr.bf16.mxu1 %v2457_v59 }
  0xc5   :  { %1434 = vmatpush1.bf16.msra.mxu0 %v2452_v60 }
  0xc6   :  { %1520 = vmatpush1.bf16.msra.mxu1 %v2455_v61  ;;  %1435 = vmatprep.subr.bf16.mxu0 %v2460_v62  ;;  %v2496_v61 = vld [vmem:[#allocation7 + $0x2a4] ss:$16 sps:$4 sm:$0xff]  }
  0xc7   :  { %1521 = vmatprep.subr.bf16.mxu1 %v2463_v63 }
  0xc9   :  { %1436 = vmatpush1.bf16.msra.mxu0 %v2458_v0  ;;  %v2499_v0 = vld [vmem:[#allocation7 + $0x2ac] ss:$16 sps:$4 sm:$0xff]  }
  0xca   :  { %1522 = vmatpush1.bf16.msra.mxu1 %v2461_v1  ;;  %1448 = vmatprep.subr.bf16.mxu0 %v2466_v2 }
  0xcb   :  { %1534 = vmatprep.subr.bf16.mxu1 %v2469_v3 }
 0x15f   :  { %v535_v11 = vpop.f32.mrb[0].mxu0 }
 0x160   :  { %v536_v12 = vadd.f32 %v535_v11, %v154_v9  ;;  %v537_v13 = vpop.f32.mrb[1].mxu0  ;;  %v578_v45 = vpop.f32.mrb[0].mxu1 }
 0x161   :  { %v538_v14 = vadd.f32 %v537_v13, %v158_v10  ;;  %v539_v15 = vpop.f32.mrb[2].mxu0  ;;  %v579_v48 = vadd.f32 %v578_v45, %v162_v41  ;;  %v580_v49 = vpop.f32.mrb[1].mxu1  ;;  %v2505_v13 = vld [vmem:[#allocation7 + $0x2cc] ss:$16 sps:$4 sm:$0xff]   ;;  %v2545_v45 = vld [vmem:[#allocation7 + $0x3a8] ss:$16 sps:$4 sm:$0xff]  }
 0x162   :  { %v595_v16 = vmul.f32 0.2, %v536_v12  ;;  %v540_v17 = vadd.f32 %v539_v15, %v154_v9  ;;  %v541_v18 = vpop.f32.mrb[3].mxu0  ;;  %vm587_vm0 = vcmp.ge.f32.partialorder %v536_v12, 0.0  ;;  %v581_v52 = vadd.f32 %v580_v49, %v166_v44  ;;  %v582_v53 = vpop.f32.mrb[2].mxu1 }
 0x163   :  { %v596_v19 = vmul.f32 0.2, %v538_v14  ;;  %v542_v20 = vadd.f32 %v541_v18, %v158_v10  ;;  %vm588_vm1 = vcmp.ge.f32.partialorder %v538_v14, 0.0  ;;  %vm589_vm4 = vcmp.ge.f32.partialorder %v579_v48, 0.0  ;;  %v584_v57 = vpop.f32.mrb[3].mxu1 }
 0x164   :  { %vm591_vm2 = vcmp.ge.f32.partialorder %v540_v17, 0.0  ;;  %v599_v21 = vmul.f32 0.2, %v540_v17  ;;  %v603_v23 = vsel %vm587_vm0, %v536_v12, %v595_v16  ;;  %v597_v55 = vmul.f32 0.2, %v579_v48 }
 0x165   :  { %vm592_vm3 = vcmp.ge.f32.partialorder %v542_v20, 0.0  ;;  %v600_v22 = vmul.f32 0.2, %v542_v20  ;;  %v604_v26 = vsel %vm588_vm1, %v538_v14, %v596_v19  ;;  %v583_v56 = vadd.f32 %v582_v53, %v162_v41  ;;  %v2494_v9 = vld [vmem:[#allocation7 + $0x2a0] ss:$16 sps:$4 sm:$0xff]  }
 0x166   :  { %v607_v24 = vsel %vm591_vm2, %v540_v17, %v599_v21  ;;  %vm590_vm5 = vcmp.ge.f32.partialorder %v581_v52, 0.0  ;;  %v598_v59 = vmul.f32 0.2, %v581_v52  ;;  %v585_v60 = vadd.f32 %v584_v57, %v166_v44  ;;  %v2497_v10 = vld [vmem:[#allocation7 + $0x2a8] ss:$16 sps:$4 sm:$0xff]   ;;  %v2563_v57 = vld [vmem:[#allocation8 + $0x80] sm:$0xff]  }
 0x167   :  { %v611_v25 = vpack.c.bf16 %v607_v24, %v603_v23  ;;  %v608_v27 = vsel %vm592_vm3, %v542_v20, %v600_v22  ;;  %v605_v62 = vsel %vm589_vm4, %v579_v48, %v597_v55  ;;  %vm593_vm6 = vcmp.ge.f32.partialorder %v583_v56, 0.0  ;;  %v2502_v12 = vld [vmem:[#allocation7 + $0x2c4] ss:$16 sps:$4 sm:$0xff]   ;;  %v2500_v14 = vld [vmem:[#allocation7 + $0x2c0] ss:$16 sps:$4 sm:$0xff]  }
 0x168   :  { %v612_v28 = vpack.c.bf16 %v608_v27, %v604_v26  ;;  %v601_v63 = vmul.f32 0.2, %v583_v56  ;;  %vm594_vm7 = vcmp.ge.f32.partialorder %v585_v60, 0.0  ;;  %v602_v1 = vmul.f32 0.2, %v585_v60  ;;  %v2561_v55 = vld [vmem:[#allocation8 + $0xc0] sm:$0xff]  }
 0x169   :  { %v606_v2 = vsel %vm590_vm5, %v581_v52, %v598_v59  ;;  %v2503_v15 = vld [vmem:[#allocation7 + $0x2c8] ss:$16 sps:$4 sm:$0xff]   ;;  %v2508_v16 = vld [vmem:[#allocation7 + $0x2e4] ss:$16 sps:$4 sm:$0xff]   ;;  %v2511_v17 = vld [vmem:[#allocation7 + $0x2ec] ss:$16 sps:$4 sm:$0xff]  }
 0x16a   :  { %1437 = vmatprep.mubr.bf16.mxu0 %v612_v28  ;;  %1523 = vmatprep.mubr.bf16.mxu1 %v612_v28  ;;  %v609_v3 = vsel %vm593_vm6, %v583_v56, %v601_v63  ;;  %v610_v7 = vsel %vm594_vm7, %v585_v60, %v602_v1  ;;  %v2506_v18 = vld [vmem:[#allocation7 + $0x2e0] ss:$16 sps:$4 sm:$0xff]   ;;  %v2509_v19 = vld [vmem:[#allocation7 + $0x2e8] ss:$16 sps:$4 sm:$0xff]   ;;  %v2514_v20 = vld [vmem:[#allocation7 + $0x304] ss:$16 sps:$4 sm:$0xff]  }
 0x16b   :  { %1438 = vmatmul.mubr.bf16.vlgmr.msra.gmra.mrb[4].mxu0 %v611_v25  ;;  %1524 = vmatmul.mubr.bf16.vlgmr.msra.gmra.mrb[4].mxu1 %v611_v25  ;;  %v2842_v4 = vpack.c.bf16 %v609_v3, %v605_v62  ;;  %v614_v11 = vpack.c.bf16 %v610_v7, %v606_v2  ;;  %v2517_v21 = vld [vmem:[#allocation7 + $0x30c] ss:$16 sps:$4 sm:$0xff]   ;;  %v2512_v22 = vld [vmem:[#allocation7 + $0x300] ss:$16 sps:$4 sm:$0xff]   ;;  %v2515_v23 = vld [vmem:[#allocation7 + $0x308] ss:$16 sps:$4 sm:$0xff]  }
 0x16c   :  { %1449 = vmatpush1.bf16.msra.mxu0 %v2464_v29  ;;  %1535 = vmatpush1.bf16.msra.mxu1 %v2467_v30  ;;  %v2520_v24 = vld [vmem:[#allocation7 + $0x324] ss:$16 sps:$4 sm:$0xff]   ;;  %v2523_v25 = vld [vmem:[#allocation7 + $0x32c] ss:$16 sps:$4 sm:$0xff]   ;;  %v2518_v26 = vld [vmem:[#allocation7 + $0x320] ss:$16 sps:$4 sm:$0xff]  }
 0x16d   :  { %1450 = vmatprep.subr.bf16.mxu0 %v2472_v31  ;;  %1536 = vmatprep.subr.bf16.mxu1 %v2475_v32  ;;  %v2521_v27 = vld [vmem:[#allocation7 + $0x328] ss:$16 sps:$4 sm:$0xff]   ;;  %v2526_v28 = vld [vmem:[#allocation7 + $0x344] ss:$16 sps:$4 sm:$0xff]   ;;  %v2529_v29 = vld [vmem:[#allocation7 + $0x34c] ss:$16 sps:$4 sm:$0xff]  }
 0x16e   :  { %1480 = vmatprep.mubr.bf16.mxu0 %v614_v11  ;;  %1566 = vmatprep.mubr.bf16.mxu1 %v614_v11  ;;  %v2524_v30 = vld [vmem:[#allocation7 + $0x340] ss:$16 sps:$4 sm:$0xff]   ;;  %v2527_v31 = vld [vmem:[#allocation7 + $0x348] ss:$16 sps:$4 sm:$0xff]   ;;  %v2532_v32 = vld [vmem:[#allocation7 + $0x364] ss:$16 sps:$4 sm:$0xff]  }
 0x16f   :  { %v2539_v41 = vld [vmem:[#allocation7 + $0x388] ss:$16 sps:$4 sm:$0xff]   ;;  %v2542_v44 = vld [vmem:[#allocation7 + $0x3a0] ss:$16 sps:$4 sm:$0xff]  }
 0x170   :  { %1451 = vmatpush1.bf16.msra.mxu0 %v2470_v33  ;;  %1537 = vmatpush1.bf16.msra.mxu1 %v2473_v34  ;;  %v2535_v33 = vld [vmem:[#allocation7 + $0x36c] ss:$16 sps:$4 sm:$0xff]   ;;  %v2530_v34 = vld [vmem:[#allocation7 + $0x360] ss:$16 sps:$4 sm:$0xff]   ;;  %v2551_v49 = vld [vmem:[#allocation7 + $0x3c8] ss:$16 sps:$4 sm:$0xff]  }
 0x171   :  { %1452 = vmatprep.subr.bf16.mxu0 %v2478_v36  ;;  %1538 = vmatprep.subr.bf16.mxu1 %v2481_v37  ;;  %v2533_v36 = vld [vmem:[#allocation7 + $0x368] ss:$16 sps:$4 sm:$0xff]   ;;  %v2538_v37 = vld [vmem:[#allocation7 + $0x384] ss:$16 sps:$4 sm:$0xff]   ;;  %v2548_v48 = vld [vmem:[#allocation7 + $0x3c0] ss:$16 sps:$4 sm:$0xff]  }
 0x172   :  { %v2554_v52 = vld [vmem:[#allocation7 + $0x3e0] ss:$16 sps:$4 sm:$0xff]   ;;  %v2557_v53 = vld [vmem:[#allocation7 + $0x3e8] ss:$16 sps:$4 sm:$0xff]  }
 0x173   :  { %v2562_v56 = vld [vmem:[#allocation8] sm:$0xff]   ;;  %v2565_v59 = vld [vmem:[#allocation8 + $0xc8] sm:$0xff]   ;;  %v2568_v62 = vld [vmem:[#allocation8 + $0x50] sm:$0xff]  }
 0x174   :  { %1453 = vmatpush1.bf16.msra.mxu0 %v2476_v39  ;;  %1539 = vmatpush1.bf16.msra.mxu1 %v2479_v40  ;;  %v2541_v39 = vld [vmem:[#allocation7 + $0x38c] ss:$16 sps:$4 sm:$0xff]   ;;  %v2536_v40 = vld [vmem:[#allocation7 + $0x380] ss:$16 sps:$4 sm:$0xff]  }
 0x175   :  { %1454 = vmatprep.subr.bf16.mxu0 %v2484_v42  ;;  %1540 = vmatprep.subr.bf16.mxu1 %v2487_v43  ;;  %v2544_v42 = vld [vmem:[#allocation7 + $0x3a4] ss:$16 sps:$4 sm:$0xff]   ;;  %v2547_v43 = vld [vmem:[#allocation7 + $0x3ac] ss:$16 sps:$4 sm:$0xff]  }
 0x176   :  { %v2566_v60 = vld [vmem:[#allocation8 + $0x8] sm:$0xff]   ;;  %v2569_v63 = vld [vmem:[#allocation8 + $0xd0] sm:$0xff]   ;;  %v2572_v2 = vld [vmem:[#allocation8 + $0x58] sm:$0xff]  }
 0x177   :  { %v2571_v1 = vld [vmem:[#allocation8 + $0x90] sm:$0xff]   ;;  %v2573_v3 = vld [vmem:[#allocation8 + $0xd8] sm:$0xff]   ;;  %v2578_v11 = vld [vmem:[#allocation8 + $0x20] sm:$0xff]  }
 0x178   :  { %1455 = vmatpush1.bf16.msra.mxu0 %v2482_v46  ;;  %1541 = vmatpush1.bf16.msra.mxu1 %v2485_v47  ;;  %v2550_v46 = vld [vmem:[#allocation7 + $0x3c4] ss:$16 sps:$4 sm:$0xff]   ;;  %v2553_v47 = vld [vmem:[#allocation7 + $0x3cc] ss:$16 sps:$4 sm:$0xff]  }
 0x179   :  { %1456 = vmatprep.subr.bf16.mxu0 %v2490_v50  ;;  %1542 = vmatprep.subr.bf16.mxu1 %v2493_v51  ;;  %v2556_v50 = vld [vmem:[#allocation7 + $0x3e4] ss:$16 sps:$4 sm:$0xff]   ;;  %v2559_v51 = vld [vmem:[#allocation7 + $0x3ec] ss:$16 sps:$4 sm:$0xff]  }
 0x17a   :  { %v2574_v7 = vld [vmem:[#allocation8 + $0x18] sm:$0xff]  }
 0x17c   :  { %1457 = vmatpush1.bf16.msra.mxu0 %v2488_v54  ;;  %1543 = vmatpush1.bf16.msra.mxu1 %v2491_v58  ;;  %v2560_v54 = vld [vmem:[#allocation8 + $0x40] sm:$0xff]   ;;  %v2564_v58 = vld [vmem:[#allocation8 + $0x48] sm:$0xff]  }
 0x17d   :  { %1458 = vmatprep.subr.bf16.mxu0 %v2496_v61  ;;  %1544 = vmatprep.subr.bf16.mxu1 %v2499_v0  ;;  %v2567_v61 = vld [vmem:[#allocation8 + $0x88] sm:$0xff]   ;;  %v2570_v0 = vld [vmem:[#allocation8 + $0x10] sm:$0xff]  }
 0x180   :  { %1459 = vmatpush1.bf16.msra.mxu0 %v2494_v9  ;;  %1545 = vmatpush1.bf16.msra.mxu1 %v2497_v10  ;;  %v2576_v9 = vld [vmem:[#allocation8 + $0x60] sm:$0xff]  }
 0x181   :  { %1460 = vmatprep.subr.bf16.mxu0 %v2502_v12  ;;  %1546 = vmatprep.subr.bf16.mxu1 %v2505_v13  ;;  %v2577_v10 = vld [vmem:[#allocation8 + $0xe0] sm:$0xff]   ;;  %v2580_v13 = vld [vmem:[#allocation8 + $0x68] sm:$0xff]  }
 0x182   :  { %v2579_v12 = vld [vmem:[#allocation8 + $0xa0] sm:$0xff]  }
 0x184   :  { %1461 = vmatpush1.bf16.msra.mxu0 %v2500_v14  ;;  %1547 = vmatpush1.bf16.msra.mxu1 %v2503_v15  ;;  %v2581_v14 = vld [vmem:[#allocation8 + $0xe8] sm:$0xff]  }
 0x185   :  { %1462 = vmatprep.subr.bf16.mxu0 %v2508_v16  ;;  %1548 = vmatprep.subr.bf16.mxu1 %v2511_v17  ;;  %v2582_v15 = vld [vmem:[#allocation8 + $0x28] sm:$0xff]   ;;  %v2584_v17 = vld [vmem:[#allocation8 + $0x70] sm:$0xff]  }
 0x186   :  { %v2583_v16 = vld [vmem:[#allocation8 + $0xa8] sm:$0xff]  }
 0x188   :  { %1463 = vmatpush1.bf16.msra.mxu0 %v2506_v18  ;;  %1549 = vmatpush1.bf16.msra.mxu1 %v2509_v19  ;;  %v2585_v18 = vld [vmem:[#allocation8 + $0xf0] sm:$0xff]  }
 0x189   :  { %1464 = vmatprep.subr.bf16.mxu0 %v2514_v20  ;;  %1550 = vmatprep.subr.bf16.mxu1 %v2517_v21  ;;  %v2586_v19 = vld [vmem:[#allocation8 + $0x30] sm:$0xff]   ;;  %v2588_v21 = vld [vmem:[#allocation8 + $0x78] sm:$0xff]  }
 0x18a   :  { %v2587_v20 = vld [vmem:[#allocation8 + $0xb0] sm:$0xff]  }
 0x18c   :  { %1465 = vmatpush1.bf16.msra.mxu0 %v2512_v22  ;;  %1551 = vmatpush1.bf16.msra.mxu1 %v2515_v23  ;;  %v2589_v22 = vld [vmem:[#allocation8 + $0xf8] sm:$0xff]  }
 0x18d   :  { %1466 = vmatprep.subr.bf16.mxu0 %v2520_v24  ;;  %1552 = vmatprep.subr.bf16.mxu1 %v2523_v25  ;;  %v2590_v23 = vld [vmem:[#allocation8 + $0x38] sm:$0xff]   ;;  %v743_v25 = vld [vmem:[%s2881_s4] sm:$0xf] }
 0x18e   :  { %v2591_v24 = vld [vmem:[#allocation8 + $0xb8] sm:$0xff]  }
 0x190   :  { %1467 = vmatpush1.bf16.msra.mxu0 %v2518_v26  ;;  %1553 = vmatpush1.bf16.msra.mxu1 %v2521_v27  ;;  %v748_v26 = vrot.slane %v743_v25, %v153_v6  ;;  %v756_v27 = vrot.slane %v743_v25, %v161_v35 }
 0x191   :  { %1468 = vmatprep.subr.bf16.mxu0 %v2526_v28  ;;  %1554 = vmatprep.subr.bf16.mxu1 %v2529_v29  ;;  %v752_v28 = vrot.slane %v743_v25, %v157_v8  ;;  %v760_v29 = vrot.slane %v743_v25, %v165_v38 }
 0x194   :  { %1469 = vmatpush1.bf16.msra.mxu0 %v2524_v30  ;;  %1555 = vmatpush1.bf16.msra.mxu1 %v2527_v31 }
 0x195   :  { %1470 = vmatprep.subr.bf16.mxu0 %v2532_v32  ;;  %1556 = vmatprep.subr.bf16.mxu1 %v2535_v33 }
 0x198   :  { %1471 = vmatpush1.bf16.msra.mxu0 %v2530_v34  ;;  %1557 = vmatpush1.bf16.msra.mxu1 %v2533_v36 }
 0x199   :  { %1472 = vmatprep.subr.bf16.mxu0 %v2538_v37  ;;  %1558 = vmatprep.subr.bf16.mxu1 %v2541_v39 }
 0x19c   :  { %1473 = vmatpush1.bf16.msra.mxu0 %v2536_v40  ;;  %1559 = vmatpush1.bf16.msra.mxu1 %v2539_v41 }
 0x19d   :  { %1474 = vmatprep.subr.bf16.mxu0 %v2544_v42  ;;  %1560 = vmatprep.subr.bf16.mxu1 %v2547_v43 }
 0x1a0   :  { %1475 = vmatpush1.bf16.msra.mxu0 %v2542_v44  ;;  %1561 = vmatpush1.bf16.msra.mxu1 %v2545_v45 }
 0x1a1   :  { %1476 = vmatprep.subr.bf16.mxu0 %v2550_v46  ;;  %1562 = vmatprep.subr.bf16.mxu1 %v2553_v47 }
 0x1a4   :  { %1477 = vmatpush1.bf16.msra.mxu0 %v2548_v48  ;;  %1563 = vmatpush1.bf16.msra.mxu1 %v2551_v49 }
 0x1a5   :  { %1478 = vmatprep.subr.bf16.mxu0 %v2556_v50  ;;  %1564 = vmatprep.subr.bf16.mxu1 %v2559_v51 }
 0x1a8   :  { %1479 = vmatpush1.bf16.msra.mxu0 %v2554_v52  ;;  %1565 = vmatpush1.bf16.msra.mxu1 %v2557_v53 }
 0x1a9   :  { %2198 = vmatprep.subr.bf16.mxu0 %v2560_v54  ;;  %2220 = vmatprep.subr.bf16.mxu1 %v2561_v55 }
 0x1ab   :  { %1481 = vmatmul.mubr.bf16.vlgmr.msra.gmra.mrb[4].mxu0 %v2842_v4  ;;  %1567 = vmatmul.mubr.bf16.vlgmr.msra.gmra.mrb[4].mxu1 %v2842_v4  ;;  %v2575_v4 = vld [vmem:[#allocation8 + $0x98] sm:$0xff]  }
 0x1ac   :  { %2199 = vmatpush3.bf16.msra.mxu0 %v2562_v56  ;;  %2221 = vmatpush3.bf16.msra.mxu1 %v2563_v57 }
 0x1ad   :  { %2200 = vmatprep.subr.bf16.mxu0 %v2564_v58  ;;  %2222 = vmatprep.subr.bf16.mxu1 %v2565_v59 }
 0x1b0   :  { %2201 = vmatpush3.bf16.msra.mxu0 %v2566_v60  ;;  %2223 = vmatpush3.bf16.msra.mxu1 %v2567_v61 }
 0x1b1   :  { %2202 = vmatprep.subr.bf16.mxu0 %v2568_v62  ;;  %2224 = vmatprep.subr.bf16.mxu1 %v2569_v63 }
 0x1b4   :  { %2203 = vmatpush3.bf16.msra.mxu0 %v2570_v0  ;;  %2225 = vmatpush3.bf16.msra.mxu1 %v2571_v1  ;;  %v2165_v1 = vld [vmem:[%s2883_s6] ss:$0 sm:$0xff]  ;;  %s2680_s6 = scalar_lea.vmem %s1958_s13, 256 }
 0x1b5   :  { %2204 = vmatprep.subr.bf16.mxu0 %v2572_v2  ;;  %2226 = vmatprep.subr.bf16.mxu1 %v2573_v3  ;;  %p2681_p4 = scmp.ne.s32.totalorder %s1958_s13, %s2680_s6  ;;  %p2686_p6 = scmp.lt.s32.totalorder %s2680_s6, %s2680_s6 }
 0x1b7   :  { %p2687_p7 = por %p2686_p6, %p2685_p5 }
 0x1b8   :  { %2205 = vmatpush3.bf16.msra.mxu0 %v2574_v7  ;;  %2227 = vmatpush3.bf16.msra.mxu1 %v2575_v4 }
 0x1b9   :  { %2206 = vmatprep.subr.bf16.mxu0 %v2576_v9  ;;  %2228 = vmatprep.subr.bf16.mxu1 %v2577_v10  ;;  %p2688_p8 = pnand %p2687_p7, %p2681_p4 }
 0x1bc   :  { %2207 = vmatpush3.bf16.msra.mxu0 %v2578_v11  ;;  %2229 = vmatpush3.bf16.msra.mxu1 %v2579_v12 }
 0x1bd   :  { %2208 = vmatprep.subr.bf16.mxu0 %v2580_v13  ;;  %2230 = vmatprep.subr.bf16.mxu1 %v2581_v14 }
 0x1c0   :  { %2209 = vmatpush3.bf16.msra.mxu0 %v2582_v15  ;;  %2231 = vmatpush3.bf16.msra.mxu1 %v2583_v16 }
 0x1c1   :  { %2210 = vmatprep.subr.bf16.mxu0 %v2584_v17  ;;  %2232 = vmatprep.subr.bf16.mxu1 %v2585_v18 }
 0x1c4   :  { %2211 = vmatpush3.bf16.msra.mxu0 %v2586_v19  ;;  %2233 = vmatpush3.bf16.msra.mxu1 %v2587_v20 }
 0x1c5   :  { %2212 = vmatprep.subr.bf16.mxu0 %v2588_v21  ;;  %2234 = vmatprep.subr.bf16.mxu1 %v2589_v22 }
 0x1c8   :  { %2213 = vmatpush3.bf16.msra.mxu0 %v2590_v23  ;;  %2235 = vmatpush3.bf16.msra.mxu1 %v2591_v24 }
 0x27e   :  { %v1482_v30 = vpop.f32.mrb[4].mxu0  ;;  %v1568_v31 = vpop.f32.mrb[4].mxu1 }
 0x27f   :  { %v2242_v32 = vadd.f32 %v1482_v30, %v748_v26  ;;  %v2246_v33 = vadd.f32 %v1568_v31, %v756_v27  ;;  %v1484_v34 = vpop.f32.mrb[5].mxu0  ;;  %v1570_v36 = vpop.f32.mrb[5].mxu1 }
 0x280   :  { %v2243_v37 = vadd.f32 %v1484_v34, %v752_v28  ;;  %v2247_v39 = vadd.f32 %v1570_v36, %v760_v29  ;;  %v1486_v40 = vpop.f32.mrb[6].mxu0  ;;  %v1572_v41 = vpop.f32.mrb[6].mxu1 }
 0x281   :  { %vm1577_vm8 = vcmp.ge.f32.partialorder %v2242_v32, 0.0  ;;  %v1585_v6 = vmul.f32 0.2, %v2242_v32  ;;  %vm1579_vm9 = vcmp.ge.f32.partialorder %v2246_v33, 0.0  ;;  %v1587_v35 = vmul.f32 0.2, %v2246_v33 }
 0x282   :  { %vm1578_vm10 = vcmp.ge.f32.partialorder %v2243_v37, 0.0  ;;  %v1586_v42 = vmul.f32 0.2, %v2243_v37  ;;  %vm1580_vm11 = vcmp.ge.f32.partialorder %v2247_v39, 0.0  ;;  %v1588_v8 = vmul.f32 0.2, %v2247_v39 }
 0x283   :  { %v2244_v5 = vadd.f32 %v1486_v40, %v748_v26  ;;  %v2248_v38 = vadd.f32 %v1572_v41, %v756_v27  ;;  %v1488_v43 = vpop.f32.mrb[7].mxu0  ;;  %v1574_v44 = vpop.f32.mrb[7].mxu1  ;;  %v1593_v45 = vsel %vm1577_vm8, %v2242_v32, %v1585_v6  ;;  %v1595_v46 = vsel %vm1579_vm9, %v2246_v33, %v1587_v35 }
 0x284   :  { %v2245_v47 = vadd.f32 %v1488_v43, %v752_v28  ;;  %v2249_v48 = vadd.f32 %v1574_v44, %v760_v29  ;;  %v1594_v55 = vsel %vm1578_vm10, %v2243_v37, %v1586_v42  ;;  %v1596_v56 = vsel %vm1580_vm11, %v2247_v39, %v1588_v8 }
 0x285   :  { %vm1581_vm12 = vcmp.ge.f32.partialorder %v2244_v5, 0.0  ;;  %v1589_v49 = vmul.f32 0.2, %v2244_v5  ;;  %vm1583_vm13 = vcmp.ge.f32.partialorder %v2248_v38, 0.0  ;;  %v1591_v50 = vmul.f32 0.2, %v2248_v38 }
 0x286   :  { %vm1582_vm14 = vcmp.ge.f32.partialorder %v2245_v47, 0.0  ;;  %v1590_v51 = vmul.f32 0.2, %v2245_v47  ;;  %vm1584_vm15 = vcmp.ge.f32.partialorder %v2249_v48, 0.0  ;;  %v1592_v52 = vmul.f32 0.2, %v2249_v48 }
 0x287   :  { %v1597_v53 = vsel %vm1581_vm12, %v2244_v5, %v1589_v49  ;;  %v1599_v54 = vsel %vm1583_vm13, %v2248_v38, %v1591_v50 }
 0x288   :  { %v1601_v57 = vpack.c.bf16 %v1597_v53, %v1593_v45  ;;  %v1603_v58 = vpack.c.bf16 %v1599_v54, %v1595_v46  ;;  %v1598_v59 = vsel %vm1582_vm14, %v2245_v47, %v1590_v51  ;;  %v1600_v60 = vsel %vm1584_vm15, %v2249_v48, %v1592_v52 }
 0x289   :  { %v1602_v61 = vpack.c.bf16 %v1598_v59, %v1594_v55  ;;  %v1604_v62 = vpack.c.bf16 %v1600_v60, %v1596_v56 }
 0x28b   :  { %1900 = vmatprep.mubr.bf16.mxu0 %v1602_v61  ;;  %1941 = vmatprep.mubr.bf16.mxu1 %v1604_v62 }
 0x28c   :  { %1901 = vmatmul.mubr.bf16.vlgmr.msra.gmra.mrb[8].mxu0 %v1601_v57  ;;  %1942 = vmatmul.mubr.bf16.vlgmr.msra.gmra.mrb[8].mxu1 %v1603_v58 }
 0x35f   :  { %v2214_v63 = vpop.f32.mrb[8].mxu0  ;;  %v2236_v0 = vpop.f32.mrb[8].mxu1 }
 0x360   :  { %v2215_v2 = vpop.f32.mrb[9].mxu0  ;;  %v2237_v3 = vpop.f32.mrb[9].mxu1 }
 0x361   :  { %v2216_v7 = vadd.f32 %v2215_v2, %v2214_v63  ;;  %v2238_v4 = vadd.f32 %v2237_v3, %v2236_v0  ;;  %v2217_v9 = vpop.f32.mrb[10].mxu0  ;;  %v2239_v10 = vpop.f32.mrb[10].mxu1 }
 0x362   :  { %v2218_v11 = vpop.f32.mrb[11].mxu0  ;;  %v2240_v12 = vpop.f32.mrb[11].mxu1 }
 0x363   :  { %v1903_v13 = vadd.f32 %v2216_v7, %v2165_v1  ;;  %v2219_v14 = vadd.f32 %v2218_v11, %v2217_v9  ;;  %v2241_v15 = vadd.f32 %v2240_v12, %v2239_v10 }
 0x365   :  { %v1944_v16 = vadd.f32 %v2238_v4, %v1903_v13  ;;  %v1906_v17 = vadd.f32 %v2219_v14, %v2165_v1 }
 0x367   :  { %1950 = vst [vmem:[#allocation10] sm:$0xff] %v1944_v16  ;;  %v1947_v18 = vadd.f32 %v2241_v15, %v1906_v17 }
 0x369   :  { %1951 = vst [vmem:[#allocation10 + $0x8] sm:$0xff] %v1947_v18 }
 0x36a   :  { %2691 = shalt.err (!%p2688_p8)
}
 0x36b   :  { %s2692_s17 = scalar_lea.hbm %s2884_s7, 256 }
 0x36c   :  { %p2693_p9 = scmp.ne.s32.totalorder %s2884_s7, %s2692_s17  ;;  %p2696_p10 = scmp.lt.u32.totalorder %s2692_s17, %s2884_s7 }
 0x36e   :  { %p2698_p11 = pnand %p2696_p10, %p2693_p9 }
 0x370   :  { %2701 = shalt.err (!%p2698_p11)
}
 0x371   :  { %1963 = dma.vmem_to_hbm [thread:$0]  %s1958_s13, 256, %s2884_s7, [#allocation4], %s2714_s1, %s2714_s1, %s2715_s25  }
 0x372   :  { %2708 = dma.done.wait [#allocation4], 256  }
 0x373   :  { %2709 = vsyncadd [#allocation4], 4294967040 }
 0x374   :  { %1967 = vsyncpa [#allocation3], 1 }
 0x375   :  { %1968 = vsyncpa [#allocation6], 1 }
 0x376   :  { %1969 = vsyncpa [#allocation9], 1 }
 0x377   :  { %1970 = vsyncpa [#allocation4], 1 }

</bundles_post_ra>
